<compile_context>
chip_gen: v7x
topology: tpu7x:2x2x1
jax: 0.10.0
libtpu: 0.0.40
codegen_flags: <defaults>
</compile_context>

<pallas_src>
import functools
import math

import jax
import jax.numpy as jnp
from jax.experimental import pallas as pl
from jax.experimental.pallas import tpu as pltpu


# ---------------------------------------------------------------------------
# Small math helpers (in-kernel safe)
# ---------------------------------------------------------------------------

_SQRT_HALF = 0.7071067811865476


def _erf_poly(x):
    """Abramowitz & Stegun 7.1.26 erf approximation (max abs err ~1.5e-7).

    Used in-kernel because lax.erf has no guaranteed Mosaic lowering; the
    approximation error is far below the test tolerance vs the exact-erf ref.
    """
    p = 0.3275911
    a1, a2, a3, a4, a5 = (0.254829592, -0.284496736, 1.421413741,
                          -1.453152027, 1.061405429)
    sign = jnp.where(x >= 0.0, 1.0, -1.0)
    ax = jnp.abs(x)
    t = 1.0 / (1.0 + p * ax)
    poly = ((((a5 * t + a4) * t + a3) * t + a2) * t + a1) * t
    return sign * (1.0 - poly * jnp.exp(-ax * ax))


def _gelu_exact(x):
    return 0.5 * x * (1.0 + _erf_poly(x * _SQRT_HALF))


# ---------------------------------------------------------------------------
# Kernels
# ---------------------------------------------------------------------------

def _fused_kernel(w1t_ref, w2s_ref, x_ref, o_ref, *, k, m, c, inner_tile):
    """Fully fused per-batch kernel: reduce -> MLP -> softmax -> weighted sum.

    w1t_ref: (c, c)            W1^T (f32)
    w2s_ref: (k, c, c)         per-split W2^T blocks (f32)
    x_ref:   (1, k, hw_m, mc)  whole per-batch x, lane-dense, native dtype
    o_ref:   (1, hw_m, mc)     output tile
    """
    mc = m * c
    rows = x_ref.shape[2]
    n_inner = rows // inner_tile

    # ---- phase 1: a = sum_{k,hw} x  (ones @ x on the otherwise-idle MXU),
    # streamed over inner row-tiles so value sizes stay bounded.
    ones = jnp.ones((1, k * inner_tile), x_ref.dtype)      # native dtype -> MXU
    a_mc = jnp.zeros((1, mc), jnp.float32)
    for it in range(n_inner):
        blk = x_ref[0, :, it * inner_tile:(it + 1) * inner_tile, :]  # (k,t,mc)
        xf = blk.reshape(k * inner_tile, mc)                # contiguous, free
        a_mc = a_mc + jnp.dot(ones, xf, preferred_element_type=jnp.float32)

    # ---- fold the m lane-groups back to c channels (0/1 MXU matmul; avoids a
    # lane->sublane relayout).  unfold broadcasts per-channel weights back to
    # the lane-dense mc layout.
    if m > 1:
        fold = (jax.lax.broadcasted_iota(jnp.int32, (mc, c), 0) % c ==
                jax.lax.broadcasted_iota(jnp.int32, (mc, c), 1)
                ).astype(jnp.float32)                       # (mc, c)
        unfold = (jax.lax.broadcasted_iota(jnp.int32, (c, mc), 0) ==
                  jax.lax.broadcasted_iota(jnp.int32, (c, mc), 1) % c
                  ).astype(jnp.float32)                     # (c, mc)
        a = jnp.dot(a_mc, fold, preferred_element_type=jnp.float32)   # (1, c)
    else:
        unfold = None
        a = a_mc

    # ---- tiny MLP + softmax over k (all values stay lane-major (1, c)).
    h1 = _gelu_exact(jnp.dot(a, w1t_ref[...],
                             preferred_element_type=jnp.float32))      # (1, c)
    hats = [jnp.dot(h1, w2s_ref[kk], preferred_element_type=jnp.float32)
            for kk in range(k)]                                        # k x (1,c)
    mx = hats[0]
    for kk in range(1, k):
        mx = jnp.maximum(mx, hats[kk])
    exps = [jnp.exp(hh - mx) for hh in hats]
    den = exps[0]
    for kk in range(1, k):
        den = den + exps[kk]
    inv = 1.0 / den
    bars = [ee * inv for ee in exps]                                   # softmax_k
    if m > 1:
        bars = [jnp.dot(bb, unfold, preferred_element_type=jnp.float32)
                for bb in bars]                                        # k x (1,mc)

    # ---- phase 2: out = sum_k bar[k] * x[k], streamed over inner row-tiles.
    for it in range(n_inner):
        lo, hi = it * inner_tile, (it + 1) * inner_tile
        acc = x_ref[0, 0, lo:hi, :].astype(jnp.float32) * bars[0]
        for kk in range(1, k):
            acc = acc + x_ref[0, kk, lo:hi, :].astype(jnp.float32) * bars[kk]
        o_ref[0, lo:hi, :] = acc.astype(o_ref.dtype)


def _a_reduce_kernel(x_ref, a_ref, *, k):
    """Two-pass fallback, pass 1: a += ones(1, k*tile) @ x (one MXU push/step).

    x_ref: (1, k, tile, mc) current hw tile of x (native dtype)
    a_ref: (1, 1, mc)       f32 accumulator, resident across the hw-tile axis
    """
    @pl.when(pl.program_id(1) == 0)
    def _init():
        a_ref[...] = jnp.zeros_like(a_ref)

    tile = x_ref.shape[2]
    mc = x_ref.shape[3]
    xf = x_ref[0].reshape(k * tile, mc)                 # contiguous, free
    ones = jnp.ones((1, k * tile), x_ref.dtype)         # native dtype -> MXU
    a_ref[0] += jnp.dot(ones, xf, preferred_element_type=jnp.float32)


def _weighted_sum_kernel(bar_ref, x_ref, o_ref, *, k):
    """Two-pass fallback, pass 2: out = sum_k bar[k] * x[k] for one block.

    bar_ref: (1, k, mc)  f32 softmax weights, lane-tiled to match x layout
    x_ref:   (1, k, tile, mc)
    o_ref:   (1, tile, mc)
    """
    acc = x_ref[0, 0].astype(jnp.float32) * bar_ref[0, 0:1, :]
    for kk in range(1, k):
        acc = acc + x_ref[0, kk].astype(jnp.float32) * bar_ref[0, kk:kk + 1, :]
    o_ref[0] = acc.astype(o_ref.dtype)


# ---------------------------------------------------------------------------
# Layout / budget helpers
# ---------------------------------------------------------------------------

def _lane_fold_factor(c, hw):
    """m such that (m*c) % 128 == 0 (lane-dense last dim) and m | hw."""
    if c % 128 == 0:
        return 1
    m = 128 // math.gcd(c, 128)        # smallest m with (m*c) % 128 == 0
    if m * c > 1024 or hw % m != 0:
        return 1                       # awkward shape: masked stores, still correct
    return m


def _pick_hw_tile(hw_m, k, mc, itemsize, max_bytes):
    """Largest divisor of hw_m whose (k, tile, mc) block fits max_bytes.

    Prefers sublane-aligned tiles (8 rows f32 / 16 bf16 / 32 int8); never
    exceeds the byte budget.
    """
    sub = max(8, 32 // itemsize)
    max_rows = max(1, max_bytes // (k * mc * itemsize))
    if hw_m <= max_rows:
        return hw_m
    best_any = 1
    for t in range(min(hw_m, max_rows), 0, -1):
        if hw_m % t == 0:
            if t % sub == 0:
                return t
            if best_any == 1:
                best_any = t
    return best_any


def _vmem_plan():
    """Generation-aware VMEM limit and per-block byte budget."""
    cap = 128 * 1024 * 1024
    try:
        info = pltpu.get_tpu_info()
        cap = int(getattr(info, "vmem_capacity_bytes", cap) or cap)
    except Exception:
        pass
    if cap <= 64 * 1024 * 1024:        # v7x-class TensorCore (64 MiB VMEM)
        return {"vmem_limit": 40 * 1024 * 1024, "tile_budget": 3 * 1024 * 1024}
    return {"vmem_limit": 64 * 1024 * 1024, "tile_budget": 8 * 1024 * 1024}


# ---------------------------------------------------------------------------
# Wrapper
# ---------------------------------------------------------------------------

def split_attention(x_all, w1, w2, k, *, force_two_pass=False):
    """x_all: (b, k, h, w, c); w1: (c, c); w2: (k*c, c) (PyTorch Linear layout)."""
    b, k_in, h, w, c = x_all.shape
    assert k_in == k
    hw = h * w
    out_dtype = x_all.dtype
    itemsize = jnp.dtype(x_all.dtype).itemsize

    m = _lane_fold_factor(c, hw)
    hw_m = hw // m
    mc = m * c
    x_dense = x_all.reshape(b, k, hw_m, mc)        # free contiguous reshape

    plan = _vmem_plan()
    vmem_limit = plan["vmem_limit"]
    tile_budget = plan["tile_budget"]

    w1t = jnp.asarray(w1, jnp.float32).T           # (c, c)

    # Fused gate: per-batch x + out, double-buffered, plus slack for weights /
    # f32 temporaries / internal scratch must fit the generation's VMEM limit.
    x_bytes = k * hw_m * mc * itemsize
    o_bytes = hw_m * mc * itemsize
    fused_fits = 2 * (x_bytes + o_bytes) + 8 * 1024 * 1024 <= vmem_limit

    if fused_fits and not force_two_pass:
        # ------------- fused single pass: 1 HBM read + 1 HBM write of x ------
        w2s = jnp.transpose(jnp.asarray(w2, jnp.float32).reshape(k, c, c),
                            (0, 2, 1))             # (k, c, c) per-split W2^T
        inner_tile = _pick_hw_tile(hw_m, k, mc, 4, 2 * 1024 * 1024)
        out_dense = pl.pallas_call(
            functools.partial(_fused_kernel, k=k, m=m, c=c,
                              inner_tile=inner_tile),
            out_shape=jax.ShapeDtypeStruct((b, hw_m, mc), out_dtype),
            grid=(b,),
            in_specs=[
                pl.BlockSpec((c, c), lambda i: (0, 0)),
                pl.BlockSpec((k, c, c), lambda i: (0, 0, 0)),
                pl.BlockSpec((1, k, hw_m, mc), lambda i: (i, 0, 0, 0)),
            ],
            out_specs=pl.BlockSpec((1, hw_m, mc), lambda i: (i, 0, 0)),
            compiler_params=pltpu.CompilerParams(
                dimension_semantics=("parallel",),
                vmem_limit_bytes=vmem_limit),
            cost_estimate=pl.CostEstimate(
                flops=4 * b * k * hw * c + 2 * b * (c * c + k * c * c),
                transcendentals=b * (c + k * c),
                bytes_accessed=(b * k * hw * c + b * hw * c) * itemsize),
        )(w1t, w2s, x_dense)
        return out_dense.reshape(b, h, w, c)

    # ------------- two-pass streaming fallback (large per-batch x) -----------
    tile = _pick_hw_tile(hw_m, k, mc, itemsize, tile_budget)
    n_tiles = hw_m // tile

    a_partial = pl.pallas_call(
        functools.partial(_a_reduce_kernel, k=k),
        out_shape=jax.ShapeDtypeStruct((b, 1, mc), jnp.float32),
        grid=(b, n_tiles),
        in_specs=[pl.BlockSpec((1, k, tile, mc), lambda i, j: (i, 0, j, 0))],
        out_specs=pl.BlockSpec((1, 1, mc), lambda i, j: (i, 0, 0)),
        compiler_params=pltpu.CompilerParams(
            dimension_semantics=("parallel", "arbitrary"),
            vmem_limit_bytes=vmem_limit),
        cost_estimate=pl.CostEstimate(
            flops=2 * b * k * hw * c, transcendentals=0,
            bytes_accessed=b * k * hw * c * itemsize + b * mc * 4),
    )(x_dense)

    # Fold the m lane-groups back to (b, c); tiny MLP + softmax in plain XLA
    # (batched over b, exact erf GELU), off the streaming critical path.
    a = a_partial.reshape(b, m, c).sum(axis=1)                   # (b, c)
    w2t = jnp.asarray(w2, jnp.float32).T                         # (c, k*c)
    hat = jax.nn.gelu(a @ w1t, approximate=False) @ w2t          # (b, k*c)
    bar = jax.nn.softmax(hat.reshape(b, k, c), axis=1)           # (b, k, c)
    bar_tiled = jnp.tile(bar, (1, 1, m)).astype(jnp.float32)     # (b, k, mc)

    out_dense = pl.pallas_call(
        functools.partial(_weighted_sum_kernel, k=k),
        out_shape=jax.ShapeDtypeStruct((b, hw_m, mc), out_dtype),
        grid=(b, n_tiles),
        in_specs=[
            pl.BlockSpec((1, k, mc), lambda i, j: (i, 0, 0)),
            pl.BlockSpec((1, k, tile, mc), lambda i, j: (i, 0, j, 0)),
        ],
        out_specs=pl.BlockSpec((1, tile, mc), lambda i, j: (i, j, 0)),
        compiler_params=pltpu.CompilerParams(
            dimension_semantics=("parallel", "parallel"),
            vmem_limit_bytes=vmem_limit),
        cost_estimate=pl.CostEstimate(
            flops=2 * b * k * hw * c, transcendentals=0,
            bytes_accessed=(b * k * hw * c + b * hw * c) * itemsize
                           + b * k * mc * 4),
    )(bar_tiled, x_dense)

    return out_dense.reshape(b, h, w, c)


# ---------------------------------------------------------------------------
# Pure-JAX reference (mirrors the PyTorch forward)
# ---------------------------------------------------------------------------

def split_attention_ref(x_all, w1, w2, k):
    b, _, h, w, c = x_all.shape
    x = x_all.reshape(b, k, -1, c).astype(jnp.float32)
    a = jnp.sum(jnp.sum(x, axis=1), axis=1)                        # (b, c)
    hat = jax.nn.gelu(a @ w1.T, approximate=False) @ w2.T          # (b, k*c)
    bar = jax.nn.softmax(hat.reshape(b, k, c), axis=1)
    out = jnp.sum(bar[:, :, None, :] * x, axis=1)
    return out.reshape(b, h, w, c).astype(x_all.dtype)


if __name__ == "__main__":
    # Small, deterministic problem consistent with the module.
    b, k, h, w, c = 2, 3, 8, 8, 32

    key = jax.random.PRNGKey(0)
    kx, k1, k2 = jax.random.split(key, 3)
    x_all = jax.random.normal(kx, (b, k, h, w, c), dtype=jnp.float32)
    # nn.Linear(channel, channel, bias=False)   -> weight (c, c)
    w1 = jax.random.normal(k1, (c, c), dtype=jnp.float32) * (1.0 / jnp.sqrt(c))
    # nn.Linear(channel, channel*k, bias=False) -> weight (k*c, c)
    w2 = jax.random.normal(k2, (k * c, c), dtype=jnp.float32) * (1.0 / jnp.sqrt(c))

    ref = jax.block_until_ready(split_attention_ref(x_all, w1, w2, k))

    # Fused single-pass path (default at these shapes).
    out_fused = jax.block_until_ready(split_attention(x_all, w1, w2, k))
    assert out_fused.shape == (b, h, w, c)
    assert jnp.allclose(out_fused, ref, atol=1e-4, rtol=1e-4), \
        "fused kernel/ref mismatch"

    # Two-pass streaming fallback (exercised explicitly for coverage).
    out_two = jax.block_until_ready(
        split_attention(x_all, w1, w2, k, force_two_pass=True))
    assert jnp.allclose(out_two, ref, atol=1e-4, rtol=1e-4), \
        "two-pass kernel/ref mismatch"

    print("KERNEL_OK")
</pallas_src>

<mosaic_0001>
module attributes {stable_mosaic.version = 11 : i64} {
  func.func @_fused_kernel(%arg0: i32, %arg1: memref<32x32xf32, #tpu.memory_space<vmem>>, %arg2: memref<3x32x32xf32, #tpu.memory_space<vmem>>, %arg3: memref<1x3x16x128xf32, #tpu.memory_space<vmem>>, %arg4: memref<1x16x128xf32, #tpu.memory_space<vmem>>) attributes {dimension_semantics = [#tpu.dimension_semantics<parallel>], iteration_bounds = array<i64: 2>, scalar_prefetch = 0 : i64, scratch_operands = 0 : i64, tpu.core_type = #tpu.core_type<tc>, window_params = [{pipeline_mode = #tpu.pipeline_mode<synchronous>, transform_indices = @transform_0, window_bounds = array<i64: 32, 32>}, {pipeline_mode = #tpu.pipeline_mode<synchronous>, transform_indices = @transform_1, window_bounds = array<i64: 3, 32, 32>}, {transform_indices = @transform_2, window_bounds = array<i64: 1, 3, 16, 128>}, {transform_indices = @transform_3, window_bounds = array<i64: 1, 16, 128>}]} {
    %cst = arith.constant 1.000000e+00 : f32
    %0 = vector.broadcast %cst : f32 to vector<1x48xf32>
    %cst_0 = arith.constant 0.000000e+00 : f32
    %1 = vector.broadcast %cst_0 : f32 to vector<1x128xf32>
    %c0 = arith.constant 0 : index
    %c0_1 = arith.constant 0 : index
    %c0_2 = arith.constant 0 : index
    %c0_3 = arith.constant 0 : index
    %2 = vector.load %arg3[%c0, %c0_1, %c0_2, %c0_3] : memref<1x3x16x128xf32, #tpu.memory_space<vmem>>, vector<1x3x16x128xf32>
    %3 = vector.shape_cast %2 : vector<1x3x16x128xf32> to vector<3x16x128xf32>
    %4 = vector.shape_cast %3 : vector<3x16x128xf32> to vector<48x128xf32>
    %cst_4 = arith.constant dense<0.000000e+00> : vector<1x128xf32>
    %5 = tpu.matmul %0, %4, %cst_4 {dimension_numbers = #tpu.dot_dimension_numbers<[1], [0], [0], [1], [0, 0, 1, 1], [], []>} : vector<1x48xf32>, vector<48x128xf32>, vector<1x128xf32> -> vector<1x128xf32>
    %6 = arith.addf %1, %5 : vector<1x128xf32>
    %7 = tpu.iota {dimensions = array<i32: 0>} : vector<128x32xi32>
    %c32_i32 = arith.constant 32 : i32
    %c0_i32 = arith.constant 0 : i32
    %8 = arith.cmpi eq, %c32_i32, %c0_i32 : i32
    %c1_i32 = arith.constant 1 : i32
    %9 = arith.select %8, %c1_i32, %c32_i32 : i32
    %10 = vector.broadcast %9 : i32 to vector<128x32xi32>
    %11 = arith.remsi %7, %10 : vector<128x32xi32>
    %c0_i32_5 = arith.constant 0 : i32
    %12 = vector.broadcast %c0_i32_5 : i32 to vector<128x32xi32>
    %13 = arith.cmpi ne, %11, %12 : vector<128x32xi32>
    %c0_i32_6 = arith.constant 0 : i32
    %14 = vector.broadcast %c0_i32_6 : i32 to vector<128x32xi32>
    %15 = arith.cmpi slt, %11, %14 : vector<128x32xi32>
    %c0_i32_7 = arith.constant 0 : i32
    %16 = arith.cmpi slt, %9, %c0_i32_7 : i32
    %17 = vector.broadcast %16 : i1 to vector<128x32xi1>
    %18 = vector.broadcast %17 : vector<128x32xi1> to vector<128x32xi1>
    %19 = arith.xori %15, %18 : vector<128x32xi1>
    %20 = arith.andi %19, %13 : vector<128x32xi1>
    %21 = vector.broadcast %9 : i32 to vector<128x32xi32>
    %22 = arith.addi %11, %21 : vector<128x32xi32>
    %23 = arith.select %20, %22, %11 : vector<128x32xi1>, vector<128x32xi32>
    %24 = tpu.iota {dimensions = array<i32: 1>} : vector<128x32xi32>
    %25 = arith.cmpi eq, %23, %24 : vector<128x32xi32>
    %26 = arith.extui %25 : vector<128x32xi1> to vector<128x32xi32>
    %27 = arith.sitofp %26 : vector<128x32xi32> to vector<128x32xf32>
    %28 = tpu.iota {dimensions = array<i32: 0>} : vector<32x128xi32>
    %29 = tpu.iota {dimensions = array<i32: 1>} : vector<32x128xi32>
    %c32_i32_8 = arith.constant 32 : i32
    %c0_i32_9 = arith.constant 0 : i32
    %30 = arith.cmpi eq, %c32_i32_8, %c0_i32_9 : i32
    %c1_i32_10 = arith.constant 1 : i32
    %31 = arith.select %30, %c1_i32_10, %c32_i32_8 : i32
    %32 = vector.broadcast %31 : i32 to vector<32x128xi32>
    %33 = arith.remsi %29, %32 : vector<32x128xi32>
    %c0_i32_11 = arith.constant 0 : i32
    %34 = vector.broadcast %c0_i32_11 : i32 to vector<32x128xi32>
    %35 = arith.cmpi ne, %33, %34 : vector<32x128xi32>
    %c0_i32_12 = arith.constant 0 : i32
    %36 = vector.broadcast %c0_i32_12 : i32 to vector<32x128xi32>
    %37 = arith.cmpi slt, %33, %36 : vector<32x128xi32>
    %c0_i32_13 = arith.constant 0 : i32
    %38 = arith.cmpi slt, %31, %c0_i32_13 : i32
    %39 = vector.broadcast %38 : i1 to vector<32x128xi1>
    %40 = vector.broadcast %39 : vector<32x128xi1> to vector<32x128xi1>
    %41 = arith.xori %37, %40 : vector<32x128xi1>
    %42 = arith.andi %41, %35 : vector<32x128xi1>
    %43 = vector.broadcast %31 : i32 to vector<32x128xi32>
    %44 = arith.addi %33, %43 : vector<32x128xi32>
    %45 = arith.select %42, %44, %33 : vector<32x128xi1>, vector<32x128xi32>
    %46 = arith.cmpi eq, %28, %45 : vector<32x128xi32>
    %47 = arith.extui %46 : vector<32x128xi1> to vector<32x128xi32>
    %48 = arith.sitofp %47 : vector<32x128xi32> to vector<32x128xf32>
    %cst_14 = arith.constant dense<0.000000e+00> : vector<1x32xf32>
    %49 = tpu.matmul %6, %27, %cst_14 {dimension_numbers = #tpu.dot_dimension_numbers<[1], [0], [0], [1], [0, 0, 1, 1], [], []>} : vector<1x128xf32>, vector<128x32xf32>, vector<1x32xf32> -> vector<1x32xf32>
    %c0_15 = arith.constant 0 : index
    %c0_16 = arith.constant 0 : index
    %50 = vector.load %arg1[%c0_15, %c0_16] : memref<32x32xf32, #tpu.memory_space<vmem>>, vector<32x32xf32>
    %cst_17 = arith.constant dense<0.000000e+00> : vector<1x32xf32>
    %51 = tpu.matmul %49, %50, %cst_17 {dimension_numbers = #tpu.dot_dimension_numbers<[1], [0], [0], [1], [0, 0, 1, 1], [], []>} : vector<1x32xf32>, vector<32x32xf32>, vector<1x32xf32> -> vector<1x32xf32>
    %cst_18 = arith.constant 5.000000e-01 : f32
    %52 = vector.broadcast %cst_18 : f32 to vector<1x32xf32>
    %53 = arith.mulf %52, %51 : vector<1x32xf32>
    %cst_19 = arith.constant 0.707106769 : f32
    %54 = vector.broadcast %cst_19 : f32 to vector<1x32xf32>
    %55 = arith.mulf %51, %54 : vector<1x32xf32>
    %cst_20 = arith.constant 0.000000e+00 : f32
    %56 = vector.broadcast %cst_20 : f32 to vector<1x32xf32>
    %57 = arith.cmpf oge, %55, %56 : vector<1x32xf32>
    %cst_21 = arith.constant 1.000000e+00 : f32
    %cst_22 = arith.constant -1.000000e+00 : f32
    %58 = vector.broadcast %cst_21 : f32 to vector<1x32xf32>
    %59 = vector.broadcast %cst_22 : f32 to vector<1x32xf32>
    %60 = arith.select %57, %58, %59 : vector<1x32xi1>, vector<1x32xf32>
    %61 = math.absf %55 : vector<1x32xf32>
    %cst_23 = arith.constant 0.327591091 : f32
    %62 = vector.broadcast %cst_23 : f32 to vector<1x32xf32>
    %63 = arith.mulf %62, %61 : vector<1x32xf32>
    %cst_24 = arith.constant 1.000000e+00 : f32
    %64 = vector.broadcast %cst_24 : f32 to vector<1x32xf32>
    %65 = arith.addf %64, %63 : vector<1x32xf32>
    %cst_25 = arith.constant 1.000000e+00 : f32
    %66 = vector.broadcast %cst_25 : f32 to vector<1x32xf32>
    %67 = arith.divf %66, %65 : vector<1x32xf32>
    %cst_26 = arith.constant 1.06140542 : f32
    %68 = vector.broadcast %cst_26 : f32 to vector<1x32xf32>
    %69 = arith.mulf %68, %67 : vector<1x32xf32>
    %cst_27 = arith.constant -1.45315206 : f32
    %70 = vector.broadcast %cst_27 : f32 to vector<1x32xf32>
    %71 = arith.addf %69, %70 : vector<1x32xf32>
    %72 = arith.mulf %71, %67 : vector<1x32xf32>
    %cst_28 = arith.constant 1.42141378 : f32
    %73 = vector.broadcast %cst_28 : f32 to vector<1x32xf32>
    %74 = arith.addf %72, %73 : vector<1x32xf32>
    %75 = arith.mulf %74, %67 : vector<1x32xf32>
    %cst_29 = arith.constant -0.284496725 : f32
    %76 = vector.broadcast %cst_29 : f32 to vector<1x32xf32>
    %77 = arith.addf %75, %76 : vector<1x32xf32>
    %78 = arith.mulf %77, %67 : vector<1x32xf32>
    %cst_30 = arith.constant 0.254829586 : f32
    %79 = vector.broadcast %cst_30 : f32 to vector<1x32xf32>
    %80 = arith.addf %78, %79 : vector<1x32xf32>
    %81 = arith.mulf %80, %67 : vector<1x32xf32>
    %cst_31 = arith.constant 0.000000e+00 : f32
    %82 = vector.broadcast %cst_31 : f32 to vector<1x32xf32>
    %83 = arith.subf %82, %61 : vector<1x32xf32>
    %84 = arith.mulf %83, %61 : vector<1x32xf32>
    %85 = math.exp %84 : vector<1x32xf32>
    %86 = arith.mulf %81, %85 : vector<1x32xf32>
    %cst_32 = arith.constant 1.000000e+00 : f32
    %87 = vector.broadcast %cst_32 : f32 to vector<1x32xf32>
    %88 = arith.subf %87, %86 : vector<1x32xf32>
    %89 = arith.mulf %60, %88 : vector<1x32xf32>
    %cst_33 = arith.constant 1.000000e+00 : f32
    %90 = vector.broadcast %cst_33 : f32 to vector<1x32xf32>
    %91 = arith.addf %90, %89 : vector<1x32xf32>
    %92 = arith.mulf %53, %91 : vector<1x32xf32>
    %c0_34 = arith.constant 0 : index
    %c0_35 = arith.constant 0 : index
    %c0_36 = arith.constant 0 : index
    %93 = vector.load %arg2[%c0_34, %c0_35, %c0_36] : memref<3x32x32xf32, #tpu.memory_space<vmem>>, vector<1x32x32xf32>
    %94 = vector.shape_cast %93 : vector<1x32x32xf32> to vector<32x32xf32>
    %cst_37 = arith.constant dense<0.000000e+00> : vector<1x32xf32>
    %95 = tpu.matmul %92, %94, %cst_37 {dimension_numbers = #tpu.dot_dimension_numbers<[1], [0], [0], [1], [0, 0, 1, 1], [], []>} : vector<1x32xf32>, vector<32x32xf32>, vector<1x32xf32> -> vector<1x32xf32>
    %c1 = arith.constant 1 : index
    %c0_38 = arith.constant 0 : index
    %c0_39 = arith.constant 0 : index
    %96 = vector.load %arg2[%c1, %c0_38, %c0_39] : memref<3x32x32xf32, #tpu.memory_space<vmem>>, vector<1x32x32xf32>
    %97 = vector.shape_cast %96 : vector<1x32x32xf32> to vector<32x32xf32>
    %cst_40 = arith.constant dense<0.000000e+00> : vector<1x32xf32>
    %98 = tpu.matmul %92, %97, %cst_40 {dimension_numbers = #tpu.dot_dimension_numbers<[1], [0], [0], [1], [0, 0, 1, 1], [], []>} : vector<1x32xf32>, vector<32x32xf32>, vector<1x32xf32> -> vector<1x32xf32>
    %c2 = arith.constant 2 : index
    %c0_41 = arith.constant 0 : index
    %c0_42 = arith.constant 0 : index
    %99 = vector.load %arg2[%c2, %c0_41, %c0_42] : memref<3x32x32xf32, #tpu.memory_space<vmem>>, vector<1x32x32xf32>
    %100 = vector.shape_cast %99 : vector<1x32x32xf32> to vector<32x32xf32>
    %cst_43 = arith.constant dense<0.000000e+00> : vector<1x32xf32>
    %101 = tpu.matmul %92, %100, %cst_43 {dimension_numbers = #tpu.dot_dimension_numbers<[1], [0], [0], [1], [0, 0, 1, 1], [], []>} : vector<1x32xf32>, vector<32x32xf32>, vector<1x32xf32> -> vector<1x32xf32>
    %102 = arith.maximumf %95, %98 : vector<1x32xf32>
    %103 = arith.maximumf %102, %101 : vector<1x32xf32>
    %104 = arith.subf %95, %103 : vector<1x32xf32>
    %105 = math.exp %104 : vector<1x32xf32>
    %106 = arith.subf %98, %103 : vector<1x32xf32>
    %107 = math.exp %106 : vector<1x32xf32>
    %108 = arith.subf %101, %103 : vector<1x32xf32>
    %109 = math.exp %108 : vector<1x32xf32>
    %110 = arith.addf %105, %107 : vector<1x32xf32>
    %111 = arith.addf %110, %109 : vector<1x32xf32>
    %cst_44 = arith.constant 1.000000e+00 : f32
    %112 = vector.broadcast %cst_44 : f32 to vector<1x32xf32>
    %113 = arith.divf %112, %111 : vector<1x32xf32>
    %114 = arith.mulf %105, %113 : vector<1x32xf32>
    %115 = arith.mulf %107, %113 : vector<1x32xf32>
    %116 = arith.mulf %109, %113 : vector<1x32xf32>
    %cst_45 = arith.constant dense<0.000000e+00> : vector<1x128xf32>
    %117 = tpu.matmul %114, %48, %cst_45 {dimension_numbers = #tpu.dot_dimension_numbers<[1], [0], [0], [1], [0, 0, 1, 1], [], []>} : vector<1x32xf32>, vector<32x128xf32>, vector<1x128xf32> -> vector<1x128xf32>
    %cst_46 = arith.constant dense<0.000000e+00> : vector<1x128xf32>
    %118 = tpu.matmul %115, %48, %cst_46 {dimension_numbers = #tpu.dot_dimension_numbers<[1], [0], [0], [1], [0, 0, 1, 1], [], []>} : vector<1x32xf32>, vector<32x128xf32>, vector<1x128xf32> -> vector<1x128xf32>
    %cst_47 = arith.constant dense<0.000000e+00> : vector<1x128xf32>
    %119 = tpu.matmul %116, %48, %cst_47 {dimension_numbers = #tpu.dot_dimension_numbers<[1], [0], [0], [1], [0, 0, 1, 1], [], []>} : vector<1x32xf32>, vector<32x128xf32>, vector<1x128xf32> -> vector<1x128xf32>
    %c0_48 = arith.constant 0 : index
    %c0_49 = arith.constant 0 : index
    %c0_50 = arith.constant 0 : index
    %c0_51 = arith.constant 0 : index
    %120 = vector.load %arg3[%c0_48, %c0_49, %c0_50, %c0_51] : memref<1x3x16x128xf32, #tpu.memory_space<vmem>>, vector<1x1x16x128xf32>
    %121 = vector.shape_cast %120 : vector<1x1x16x128xf32> to vector<16x128xf32>
    %122 = vector.broadcast %117 : vector<1x128xf32> to vector<16x128xf32>
    %123 = arith.mulf %121, %122 : vector<16x128xf32>
    %c0_52 = arith.constant 0 : index
    %c1_53 = arith.constant 1 : index
    %c0_54 = arith.constant 0 : index
    %c0_55 = arith.constant 0 : index
    %124 = vector.load %arg3[%c0_52, %c1_53, %c0_54, %c0_55] : memref<1x3x16x128xf32, #tpu.memory_space<vmem>>, vector<1x1x16x128xf32>
    %125 = vector.shape_cast %124 : vector<1x1x16x128xf32> to vector<16x128xf32>
    %126 = vector.broadcast %118 : vector<1x128xf32> to vector<16x128xf32>
    %127 = arith.mulf %125, %126 : vector<16x128xf32>
    %128 = arith.addf %123, %127 : vector<16x128xf32>
    %c0_56 = arith.constant 0 : index
    %c2_57 = arith.constant 2 : index
    %c0_58 = arith.constant 0 : index
    %c0_59 = arith.constant 0 : index
    %129 = vector.load %arg3[%c0_56, %c2_57, %c0_58, %c0_59] : memref<1x3x16x128xf32, #tpu.memory_space<vmem>>, vector<1x1x16x128xf32>
    %130 = vector.shape_cast %129 : vector<1x1x16x128xf32> to vector<16x128xf32>
    %131 = vector.broadcast %119 : vector<1x128xf32> to vector<16x128xf32>
    %132 = arith.mulf %130, %131 : vector<16x128xf32>
    %133 = arith.addf %128, %132 : vector<16x128xf32>
    %c0_60 = arith.constant 0 : index
    %c0_61 = arith.constant 0 : index
    %c0_62 = arith.constant 0 : index
    %134 = vector.load %arg4[%c0_60, %c0_61, %c0_62] : memref<1x16x128xf32, #tpu.memory_space<vmem>>, vector<1x16x128xf32>
    %135 = vector.shape_cast %134 : vector<1x16x128xf32> to vector<16x128xf32>
    %136 = vector.shape_cast %133 : vector<16x128xf32> to vector<1x16x128xf32>
    tpu.vector_store %arg4[%c0_60, %c0_61, %c0_62], %136 {strides = array<i32>} : memref<1x16x128xf32, #tpu.memory_space<vmem>>, vector<1x16x128xf32>,
    return
  }
  func.func @transform_0(%arg0: i32) -> (i32, i32) {
    %c0_i32 = arith.constant 0 : i32
    %c0_i32_0 = arith.constant 0 : i32
    %c0_i32_1 = arith.constant 0 : i32
    return %c0_i32, %c0_i32_0 : i32, i32
  }
  func.func @transform_1(%arg0: i32) -> (i32, i32, i32) {
    %c0_i32 = arith.constant 0 : i32
    %c0_i32_0 = arith.constant 0 : i32
    %c0_i32_1 = arith.constant 0 : i32
    %c0_i32_2 = arith.constant 0 : i32
    return %c0_i32, %c0_i32_0, %c0_i32_1 : i32, i32, i32
  }
  func.func @transform_2(%arg0: i32) -> (i32, i32, i32, i32) {
    %c0_i32 = arith.constant 0 : i32
    %c0_i32_0 = arith.constant 0 : i32
    %c0_i32_1 = arith.constant 0 : i32
    %c0_i32_2 = arith.constant 0 : i32
    return %arg0, %c0_i32, %c0_i32_0, %c0_i32_1 : i32, i32, i32, i32
  }
  func.func @transform_3(%arg0: i32) -> (i32, i32, i32) {
    %c0_i32 = arith.constant 0 : i32
    %c0_i32_0 = arith.constant 0 : i32
    %c0_i32_1 = arith.constant 0 : i32
    return %arg0, %c0_i32, %c0_i32_0 : i32, i32, i32
  }
}

</mosaic_0001>

<bundles_post_ra>
// kernel: tpu_custom_call.1
= control target key start
LH: loop header
LB: loop body
LE: loop exit
PB: predicated region body
PF: predicated region fallthrough
CT: control target
= control target key end

     0   :  { %8 = vsyncpa [#allocation3], 0  ;;  %s2431_s0 = inlined_call_operand.hbm [shape: f32[32,32], index: 0, kind: input, shape index: {}]   ;;  %s2432_s1 = inlined_call_operand.hbm [shape: f32[3,32,32], index: 1, kind: input, shape index: {}]   ;;  %s2433_s2 = inlined_call_operand.hbm [shape: f32[2,3,16,128], index: 2, kind: input, shape index: {}]   ;;  %s2434_s3 = inlined_call_operand.hbm [shape: f32[2,16,128], index: 3, kind: output, shape index: {}]  }
   0x1   :  { %9 = vsyncpa [#allocation6], 0 }
   0x2   :  { %10 = vsyncpa [#allocation4], 0 }
   0x3   :  { %12 = vsyncpa [#allocation4 + $0x1], 0  ;;  %s1981_s12 = smov 0   ;;  %s1983_s13 = smov 0  }
   0x4   :  { %s1985_s14 = smov 0   ;;  %s1987_s15 = smov 0  }
   0x5 LB: > { %s2002_s16 = sadd.s32 4294967295, %s1945_s15   ;;  %s1356_s17 = sadd.s32 4294967294, %s1945_s15   ;;  %s1945_s15 = sphi %s1987_s15, %s2480_s15   ;;  %s1941_s14 = sphi %s1985_s14, %s2479_s14   ;;  %s1937_s13 = sphi %s1983_s13, %s2478_s13   ;;  %s1933_s12 = sphi %s1981_s12, %s2477_s12  }
   0x6   : > { %s2006_s18 = sadd.s32 1, %s1945_s15   ;;  %s67_s19 = sadd.s32 1, %s1941_s14 }
   0x7   : > { %s64_s20 = ssub.s32 %s1945_s15, %s2006_s18  ;;  %p74_p0 = scmp.ne.s32.totalorder %s1941_s14, %s1937_s13 }
   0x8   : > { %p65_p1 = scmp.eq.s32.totalorder %s64_s20, 0  ;;  %p75_p2 = scmp.eq.s32.totalorder %s1945_s15, 0 }
   0x9   : > { %p80_p3 = scmp.ne.s32.totalorder %s1937_s13, %s1933_s12  ;;  %p2435_p4 = scmp.eq.s32.totalorder %s2002_s16, 0 }
   0xa   : > { %s2018_s21 = scalar_select %p65_p1, %s1941_s14, %s67_s19  }
   0xb   : > { %p2020_p5 = por %p75_p2, %p74_p0  ;;  %p2026_p6 = por %p2435_p4, %p80_p3 }
   0xc   : > { %p104_p7 = scmp.eq.s32.totalorder %s2002_s16, 1  ;;  %p110_p8 = scmp.eq.s32.totalorder %s1356_s17, 1 }
   0xd   : > { %s2440_s22 = scalar_select %p2020_p5, 1, 0 }
   0xe   : > { %s2441_s23 = scalar_select %p2026_p6, 1, 0 }
   0xf   : > { %p1357_p9 = scmp.ge.s32.totalorder %s1945_s15, 1  ;;  %p117_p10 = scmp.lt.s32.totalorder %s1945_s15, 3 }
  0x10   : > { %p2033_p11 = por %p104_p7, %p74_p0  ;;  %p2037_p12 = por %p110_p8, %p80_p3 }
  0x11   : > { %p2041_p13 = pnand %p1357_p9, %p117_p10  ;;  %s1947_s27 = smov [#allocation2]  }
  0x12   : > { %s2442_s24 = scalar_select %p2033_p11, 1, 0 }
  0x13   : > { %s2443_s25 = scalar_select %p2037_p12, 1, 0 }
  0x14   : > { %s2444_s26 = scalar_select %p2041_p13, 1, 0 }
  0x15   : > { %p1708_p1 = pneg %p2041_p13  ;;  %s129_s28 = sshll.u32 %s1947_s27, 4  ;;  %s130_s28 = int_to_ptr.vmem [resolvable:$true] %s129_s28 }
  0x16   : > { %s1948_s30 = smov [#allocation5]   ;;  %s1785_s7 = scalar_lea.hbm %s2431_s0, 512 }
  0x17   : > { %p2049_p2 = pnand %p1708_p1, %p2435_p4  ;;  %s142_s4 = sshll.u32 %s1948_s30, 4  ;;  %s143_s4 = int_to_ptr.vmem [resolvable:$true] %s142_s4 }
  0x18   : > { %p1786_p7 = scmp.ne.s32.totalorder %s2431_s0, %s1785_s7  ;;  %p1792_p1 = scmp.lt.u32.totalorder %s1785_s7, %s2431_s0 }
  0x19   : > { %p1787_p8 = pneg %p2049_p2 }
  0x1b   : > { %p1788_p9 = pnand %p1787_p8, %p1786_p7 }
  0x1d   : > { %p1789_p10 = pneg %p1788_p9 }
  0x1f   : > { %p1794_p0 = pnand %p1792_p1, %p1789_p10 }
  0x21   : > { %1797 = shalt.err (!%p1794_p0)
}
  0x22   : > { %s1798_s17 = scalar_lea.vmem %s130_s28, 512  ;;  %p1806_p11 = scmp.lt.s32.totalorder %s130_s28, %s130_s28 }
  0x23   : > { %p1799_p4 = scmp.ne.s32.totalorder %s130_s28, %s1798_s17  ;;  %p1807_p6 = scmp.lt.s32.totalorder %s1798_s17, %s1798_s17 }
  0x25   : > { %p1801_p3 = pnand %p1799_p4, %p1787_p8  ;;  %p1808_p13 = por %p1807_p6, %p1806_p11 }
  0x27   : > { %p1802_p12 = pneg %p1801_p3 }
  0x29   : > { %p1809_p5 = pnand %p1808_p13, %p1802_p12 }
  0x2b   : > { %1812 = shalt.err (!%p1809_p5)
}
  0x2c   : > { %s1949_s19 = smov 128   ;;  %s1950_s20 = smov 8  }
  0x2d   : > { %1711 = dma.hbm_to_vmem [thread:$0]  (!%p2049_p2), %s2431_s0, 512, %s130_s28, [#allocation3], %s1949_s19, %s1949_s19, %s1950_s20  }
  0x2e   : > { %p2446_p4 = scmp.ne.s32.totalorder %s2440_s22, 0  ;;  %p2447_p0 = scmp.lt.s32.totalorder %s1945_s15, 2 }
  0x2f   : > { %s1813_s8 = scalar_lea.hbm %s2432_s1, 1536 }
  0x30   : > { %p2084_p3 = pnand %p2447_p0, %p2446_p4  ;;  %p1814_p5 = scmp.ne.s32.totalorder %s2432_s1, %s1813_s8 }
  0x31   : > { %p1820_p12 = scmp.lt.u32.totalorder %s1813_s8, %s2432_s1 }
  0x32   : > { %s2448_s5 = scalar_select %p2084_p3, 1, 0 }
  0x33   : > { %p1816_p6 = pnand %p1814_p5, %p1787_p8 }
  0x35   : > { %p1817_p11 = pneg %p1816_p6 }
  0x37   : > { %p1822_p13 = pnand %p1820_p12, %p1817_p11 }
  0x39   : > { %1825 = shalt.err (!%p1822_p13)
}
  0x3a   : > { %s1826_s11 = scalar_lea.vmem %s143_s4, 1536  ;;  %p1834_p1 = scmp.lt.s32.totalorder %s143_s4, %s143_s4 }
  0x3b   : > { %p1827_p7 = scmp.ne.s32.totalorder %s143_s4, %s1826_s11  ;;  %p1835_p4 = scmp.lt.s32.totalorder %s1826_s11, %s1826_s11 }
  0x3d   : > { %p1829_p9 = pnand %p1827_p7, %p1787_p8  ;;  %p1836_p0 = por %p1835_p4, %p1834_p1 }
  0x3f   : > { %p1830_p10 = pneg %p1829_p9 }
  0x41   : > { %p1837_p3 = pnand %p1836_p0, %p1830_p10 }
  0x43   : > { %1840 = shalt.err (!%p1837_p3)
}
  0x44   : > { %1714 = dma.hbm_to_vmem [thread:$0]  (!%p2049_p2), %s2432_s1, 1536, %s143_s4, [#allocation6], %s1949_s19, %s1949_s19, %s1950_s20  }
  0x45   : > { %s156_s30 = sand.u32 1, %s1945_s15   ;;  %s158_s6 = sand.u32 1, %s1941_s14  }
  0x46   : > { %s1693_s7 = smul.u32 48, %s158_s6  ;;  %s2121_s11 = scalar_lea.sflag [#allocation3], %s156_s30 }
  0x47   : > { %s1694_s8 = smul.u32 768, %s1945_s15  ;;  %p2449_p8 = scmp.ne.s32.totalorder %s2448_s5, 0 }
  0x48   : > { %s160_s28 = scalar_lea.vmem [#allocation7], %s1693_s7  ;;  %s1846_s6 = scalar_lea.hbm %s2433_s2, 1536 }
  0x49   : > { %s2117_s29 = scalar_lea.hbm %s2433_s2, %s1694_s8  ;;  %s167_s22 = sshll.u32 %s160_s28, 4  ;;  %s2119_s22 = int_to_ptr.vmem [resolvable:$true] %s167_s22 }
  0x4a   : > { %s1841_s4 = scalar_lea.hbm %s2117_s29, 768  ;;  %p1843_p3 = pneg %p2449_p8 }
  0x4b   : > { %p1842_p2 = scmp.ne.s32.totalorder %s2117_s29, %s1841_s4  ;;  %p1847_p11 = scmp.lt.u32.totalorder %s2117_s29, %s2433_s2 }
  0x4c   : > { %p1848_p12 = scmp.lt.u32.totalorder %s1846_s6, %s1841_s4  ;;  %p1850_p7 = scmp.lt.u32.totalorder %s1841_s4, %s2117_s29 }
  0x4d   : > { %p1844_p5 = pnand %p1843_p3, %p1842_p2 }
  0x4e   : > { %p1849_p13 = por %p1848_p12, %p1847_p11 }
  0x4f   : > { %p1845_p6 = pneg %p1844_p5 }
  0x50   : > { %p1851_p9 = por %p1850_p7, %p1849_p13 }
  0x52   : > { %p1852_p10 = pnand %p1851_p9, %p1845_p6 }
  0x54   : > { %1855 = shalt.err (!%p1852_p10)
}
  0x55   : > { %s1856_s30 = scalar_lea.vmem %s2119_s22, 768  ;;  %s1951_s7 = smov [#allocation7]  }
  0x56   : > { %p1857_p1 = scmp.ne.s32.totalorder %s2119_s22, %s1856_s30  ;;  %s1861_s10 = sshll.u32 %s1951_s7, 4  ;;  %s1862_s10 = int_to_ptr.vmem [resolvable:$false] %s1861_s10 }
  0x57   : > { %s1863_s28 = scalar_lea.vmem %s1862_s10, 1536  ;;  %p1864_p2 = scmp.lt.s32.totalorder %s2119_s22, %s1862_s10 }
  0x58   : > { %p1859_p4 = pnand %p1857_p1, %p1843_p3  ;;  %p1865_p5 = scmp.lt.s32.totalorder %s1863_s28, %s1856_s30 }
  0x5a   : > { %p1860_p0 = pneg %p1859_p4  ;;  %p1866_p11 = por %p1865_p5, %p1864_p2 }
  0x5c   : > { %p1867_p12 = pnand %p1866_p11, %p1860_p0 }
  0x5e   : > { %1870 = shalt.err (!%p1867_p12)
}
  0x5f   : > { %1718 = dma.hbm_to_vmem [thread:$0]  (!%p2449_p8), %s2117_s29, 768, %s2119_s22, %s2121_s11, %s1949_s19, %s1949_s19, %s1950_s20  }
  0x60   : > { %p2450_p3 = scmp.ne.s32.totalorder %s2444_s26, 0 }
  0x61   : > { %p2451_p6 = scmp.eq.s32.totalorder (!%p2450_p3), %s2002_s16, 0 }
  0x62   : > { %179 = sbr.rel (%p2450_p3) target bundleno = 1309 (0x51d), region = 32 }
  0x69   : > { %1916 = dma.done.wait (%p2451_p6), [#allocation3], 512   ;;  %p2452_p13 = pmov %p2451_p6 }
  0x6a   : > { %p2453_p7 = pmov %p2451_p6 }
  0x6b   : > { %1918 = vsyncadd (%p2452_p13), [#allocation3], 4294966784 }
  0x6c   : > { %1920 = dma.done.wait (%p2453_p7), [#allocation6], 1536   ;;  %p2454_p9 = pmov %p2451_p6 }
  0x6d   : > { %s189_s5 = sand.u32 1, %s2002_s16   ;;  %s2164_s19 = sand.u32 1, %s1937_s13  }
  0x6e   : > { %1922 = vsyncadd (%p2454_p9), [#allocation6], 4294965760  ;;  %s1695_s26 = smul.u32 48, %s2164_s19  ;;  %s190_s20 = scalar_lea.sflag [#allocation3], %s189_s5 }
  0x6f   : > { %p2455_p8 = scmp.ne.s32.totalorder %s2441_s23, 0 }
  0x70   : > { %s2167_s29 = scalar_lea.vmem [#allocation7], %s1695_s26 }
  0x71   : > { %1924 = dma.done.wait (%p2455_p8), %s190_s20, 768  }
  0x72   : > { %1926 = vsyncadd (%p2455_p8), %s190_s20, 4294966528  ;;  %v1952_v0 = vmov 0.0|0.0   ;;  %vm1953_vm0 = vmmov 0   ;;  %v1954_v1 = vmov 0.0   ;;  %v296_v2 = vlaneseq  ;;  %v2196_v11 = vld [vmem:[%s2167_s29] sm:$0xff]  ;;  %v2199_v12 = vld [vmem:[%s2167_s29 + $0x8] sm:$0xff] }
  0x73   : > { %1618 = vmatprep.subr.bf16.mxu0 %v1952_v0  ;;  %1503 = vmatprep.mubr.msk.f32.mxu0 %vm1953_vm0, %v1954_v1  ;;  %v2202_v13 = vld [vmem:[%s2167_s29 + $0x10] sm:$0xff]  ;;  %v1619_v18 = vpack.c.bf16 %v2199_v12, %v2196_v11  ;;  %v2215_v19 = vld [vmem:[%s2167_s29 + $0x18] sm:$0xff]  ;;  %v2236_v27 = vld [vmem:[%s2167_s29 + $0x20] sm:$0xff]  ;;  %v1955_v29 = vmov 1.0|1.0   ;;  %vm222_vm12 = vcmask 392192  }
  0x74   : > { %1627 = vmatprep.subr.bf16.mxu1 %v1952_v0  ;;  %1538 = vmatprep.mubr.msk.f32.mxu1 %vm1953_vm0, %v1954_v1  ;;  %v2179_v3 = vshrl.u32 %v296_v2, 7  ;;  %v2181_v4 = vand.u32 127, %v296_v2  ;;  %v1622_v25 = vpack.c.bf16 %v2215_v19, %v2202_v13  ;;  %v2239_v28 = vld [vmem:[%s2167_s29 + $0x28] sm:$0xff]  ;;  %v1956_v45 = vmov 1.0   ;;  %v649_v54 = vld [vmem:[#allocation2] sm:$0xff]  ;;  %v651_v56 = vld [vmem:[#allocation2 + $0x10] sm:$0xff] }
  0x75   : > { %1620 = vmatpush3.bf16.msra.mxu0 %v1619_v18  ;;  %v1625_v36 = vpack.c.bf16 %v2239_v28, %v2236_v27  ;;  %v650_v55 = vld [vmem:[#allocation2 + $0x8] sm:$0xff]  ;;  %v652_v58 = vld [vmem:[#allocation2 + $0x18] sm:$0xff]  ;;  %v754_v2 = vld [vmem:[#allocation5] sm:$0xff]  ;;  %s1365_s23 = sshll.u32 %s2164_s19, 4  ;;  %s1431_s4 = sshll.u32 %s2002_s16, 8 }
  0x76   : > { %v2184_v5 = vadd.s32 8, %v2179_v3  ;;  %v317_v6 = vand.u32 31, %v2179_v3  ;;  %v2188_v7 = vadd.s32 16, %v2179_v3  ;;  %v2191_v8 = vadd.s32 24, %v2179_v3  ;;  %1621 = vmatprep.subr.bf16.mxu0 %v1952_v0  ;;  %s215_s22 = scalar_lea.vmem [#allocation8], %s1365_s23  ;;  %s2387_s6 = scalar_lea.hbm %s2434_s3, %s1431_s4 }
  0x77   : > { %v301_v9 = vadd.s32 32, %v2179_v3  ;;  %v302_v10 = vadd.s32 40, %v2179_v3  ;;  %v303_v21 = vadd.s32 48, %v2179_v3  ;;  %v304_v24 = vadd.s32 56, %v2179_v3  ;;  %s1264_s11 = sshll.u32 %s215_s22, 4  ;;  %s1251_s8 = scalar_lea.sflag [#allocation4], %s2164_s19  ;;  %s2382_s11 = int_to_ptr.vmem [resolvable:$true] %s1264_s11 }
  0x78   : > { %v324_v14 = vand.u32 31, %v2184_v5  ;;  %vm2206_vm1 = vcmp.eq.s32.totalorder %v317_v6, %v2181_v4  ;;  %v331_v16 = vand.u32 31, %v2188_v7  ;;  %v338_v17 = vand.u32 31, %v2191_v8  ;;  %v755_v6 = vld [vmem:[#allocation5 + $0x8] sm:$0xff]  ;;  %s1871_s16 = scalar_lea.vmem %s2382_s11, 256  ;;  %p2474_p1 = scmp.ne.s32.totalorder %s2442_s24, 0 }
  0x79   : > { %v345_v20 = vand.u32 31, %v301_v9  ;;  %v352_v23 = vand.u32 31, %v302_v10  ;;  %v359_v31 = vand.u32 31, %v303_v21  ;;  %v366_v33 = vand.u32 31, %v304_v24  ;;  %1623 = vmatpush3.bf16.msra.mxu0 %v1622_v25  ;;  %v907_v10 = vld [vmem:[#allocation5 + $0x40] sm:$0xff]  ;;  %v910_v21 = vld [vmem:[#allocation5 + $0x58] sm:$0xff]  ;;  %p1872_p10 = scmp.ne.s32.totalorder %s2382_s11, %s1871_s16 }
  0x7a   : > { %vm508_vm2 = vcmp.eq.s32.totalorder %v324_v14, %v2181_v4  ;;  %vm2220_vm3 = vcmp.eq.s32.totalorder %v331_v16, %v2181_v4  ;;  %vm2230_vm5 = vcmp.eq.s32.totalorder %v338_v17, %v2181_v4  ;;  %v305_v34 = vadd.s32 64, %v2179_v3  ;;  %1624 = vmatprep.subr.bf16.mxu0 %v1952_v0  ;;  %v908_v14 = vld [vmem:[#allocation5 + $0x48] sm:$0xff]  ;;  %v756_v16 = vld [vmem:[#allocation5 + $0x10] sm:$0xff]  ;;  %v757_v17 = vld [vmem:[#allocation5 + $0x18] sm:$0xff]  ;;  %s1958_s9 = smov [#allocation8]  }
  0x7b   : > { %vm1628_vm4 = vmpackc.low %vm508_vm2, %vm2206_vm1  ;;  %vm2248_vm7 = vcmp.eq.s32.totalorder %v345_v20, %v2181_v4  ;;  %vm2253_vm8 = vcmp.eq.s32.totalorder %v352_v23, %v2181_v4  ;;  %v306_v35 = vadd.s32 72, %v2179_v3  ;;  %vm2269_vm10 = vcmp.eq.s32.totalorder %v359_v31, %v2181_v4  ;;  %v909_v20 = vld [vmem:[#allocation5 + $0x50] sm:$0xff]  ;;  %p1873_p4 = pnand %p1872_p10, %p2474_p1  ;;  %s1875_s30 = sshll.u32 %s1958_s9, 4  ;;  %s1876_s30 = int_to_ptr.vmem [resolvable:$false] %s1875_s30 }
  0x7c   : > { %1629 = vmatpush3.bf16.msk.msra.mxu1 %vm1628_vm4, %v1955_v29  ;;  %vm1631_vm6 = vmpackc.low %vm2230_vm5, %vm2220_vm3  ;;  %v307_v38 = vadd.s32 80, %v2179_v3  ;;  %vm2275_vm11 = vcmp.eq.s32.totalorder %v366_v33, %v2181_v4  ;;  %v373_v40 = vand.u32 31, %v305_v34  ;;  %v308_v42 = vadd.s32 88, %v2179_v3  ;;  %s1877_s7 = scalar_lea.vmem %s1876_s30, 512  ;;  %p1878_p2 = scmp.lt.s32.totalorder %s2382_s11, %s1876_s30 }
  0x7d   : > { %1630 = vmatprep.subr.bf16.mxu1 %v1952_v0  ;;  %vm1634_vm9 = vmpackc.low %vm2253_vm8, %vm2248_vm7  ;;  %v380_v41 = vand.u32 31, %v306_v35  ;;  %1626 = vmatpush3.bf16.msra.mxu0 %v1625_v36  ;;  %v309_v43 = vadd.s32 96, %v2179_v3  ;;  %v310_v44 = vadd.s32 104, %v2179_v3  ;;  %v311_v49 = vadd.s32 112, %v2179_v3  ;;  %p1874_p0 = pneg %p1873_p4  ;;  %p1879_p5 = scmp.lt.s32.totalorder %s1877_s7, %s1871_s16 }
  0x7e   : > { %1651 = vmatprep.subr.bf16.mxu0 %v1952_v0  ;;  %vm1637_vm13 = vmpackc.low %vm2275_vm11, %vm2269_vm10  ;;  %vm515_vm14 = vcmp.eq.s32.totalorder %v373_v40, %v2181_v4  ;;  %v387_v46 = vand.u32 31, %v307_v38  ;;  %v394_v47 = vand.u32 31, %v308_v42  ;;  %v312_v51 = vadd.s32 120, %v2179_v3 }
  0x7f   : > { %vm516_vm15 = vcmp.eq.s32.totalorder %v380_v41, %v2181_v4  ;;  %v401_v48 = vand.u32 31, %v309_v43  ;;  %v408_v50 = vand.u32 31, %v310_v44  ;;  %v415_v52 = vand.u32 31, %v311_v49  ;;  %p1880_p11 = por %p1879_p5, %p1878_p2 }
  0x80   : > { %1632 = vmatpush3.bf16.msk.msra.mxu1 %vm1631_vm6, %v1955_v29  ;;  %1504 = vmatmul.mubr.msk.f32.vlgmr.msra.gmra.mrb[0].mxu0 %vm222_vm12, %v1956_v45  ;;  %vm1640_vm1 = vmpackc.low %vm516_vm15, %vm515_vm14  ;;  %vm517_vm2 = vcmp.eq.s32.totalorder %v387_v46, %v2181_v4  ;;  %vm518_vm3 = vcmp.eq.s32.totalorder %v394_v47, %v2181_v4  ;;  %v422_v53 = vand.u32 31, %v312_v51  ;;  %v1652_v57 = vpack.c.bf16 %v650_v55, %v649_v54  ;;  %v832_v51 = vld [vmem:[#allocation5 + $0x20] sm:$0xff] }
  0x81   : > { %1633 = vmatprep.subr.bf16.mxu1 %v1952_v0  ;;  %1549 = vmatprep.mubr.msk.f32.mxu0 %vm1953_vm0, %v1954_v1  ;;  %vm1643_vm4 = vmpackc.low %vm518_vm3, %vm517_vm2  ;;  %vm519_vm5 = vcmp.eq.s32.totalorder %v401_v48, %v2181_v4  ;;  %vm520_vm6 = vcmp.eq.s32.totalorder %v408_v50, %v2181_v4  ;;  %vm521_vm8 = vcmp.eq.s32.totalorder %v415_v52, %v2181_v4  ;;  %vm653_vm11 = vcmask 261120   ;;  %v833_v52 = vld [vmem:[#allocation5 + $0x28] sm:$0xff]  ;;  %p1881_p12 = pnand %p1880_p11, %p1874_p0 }
  0x82   : > { %vm1646_vm7 = vmpackc.low %vm520_vm6, %vm519_vm5  ;;  %1653 = vmatpush3.bf16.msra.mxu0 %v1652_v57  ;;  %v1655_v59 = vpack.c.bf16 %v652_v58, %v651_v56  ;;  %v1658_v9 = vpack.c.bf16 %v755_v6, %v754_v2  ;;  %v1670_v15 = vpack.c.bf16 %v908_v14, %v907_v10  ;;  %v1661_v18 = vpack.c.bf16 %v757_v17, %v756_v16  ;;  %v834_v57 = vld [vmem:[#allocation5 + $0x30] sm:$0xff]  ;;  %v835_v58 = vld [vmem:[#allocation5 + $0x38] sm:$0xff] }
  0x83   : > { %1654 = vmatprep.subr.bf16.mxu0 %v1952_v0  ;;  %v1673_v22 = vpack.c.bf16 %v910_v21, %v909_v20  ;;  %v1957_v48 = vmov -1.0   ;;  %v1664_v55 = vpack.c.bf16 %v833_v52, %v832_v51 }
  0x84   : > { %1635 = vmatpush3.bf16.msk.msra.mxu1 %vm1634_vm9, %v1955_v29  ;;  %vm522_vm9 = vcmp.eq.s32.totalorder %v422_v53, %v2181_v4 }
  0x85   : > { %1636 = vmatprep.subr.bf16.mxu1 %v1952_v0  ;;  %vm1649_vm10 = vmpackc.low %vm522_vm9, %vm521_vm8 }
  0x86   : > { %1656 = vmatpush3.bf16.msra.mxu0 %v1655_v59  ;;  %v1667_v59 = vpack.c.bf16 %v835_v58, %v834_v57 }
  0x87   : > { %1657 = vmatprep.subr.bf16.mxu0 %v1952_v0 }
  0x88   : > { %1638 = vmatpush3.bf16.msk.msra.mxu1 %vm1637_vm13, %v1955_v29 }
  0x89   : > { %1639 = vmatprep.subr.bf16.mxu1 %v1952_v0 }
  0x8c   : > { %1641 = vmatpush3.bf16.msk.msra.mxu1 %vm1640_vm1, %v1955_v29 }
  0x8d   : > { %1642 = vmatprep.subr.bf16.mxu1 %v1952_v0 }
  0x90   : > { %1644 = vmatpush3.bf16.msk.msra.mxu1 %vm1643_vm4, %v1955_v29 }
  0x91   : > { %1645 = vmatprep.subr.bf16.mxu1 %v1952_v0 }
  0x94   : > { %1647 = vmatpush3.bf16.msk.msra.mxu1 %vm1646_vm7, %v1955_v29 }
  0x95   : > { %1648 = vmatprep.subr.bf16.mxu1 %v1952_v0 }
  0x98   : > { %1650 = vmatpush3.bf16.msk.msra.mxu1 %vm1649_vm10, %v1955_v29 }
  0x99   : > { %1669 = vmatprep.subr.bf16.mxu1 %v1952_v0 }
 0x153   : > { %v292_v60 = vpop.f32.mrb[0].mxu0 }
 0x154   : > { %v1505_v61 = vpop.f32.mrb[1].mxu0  ;;  %1539 = vmatmul.mubr.f32.vlgmr.msra.gmra.mrb[0].mxu1 %v292_v60  ;;  %v559_v60 = vand.u32 31, %v2181_v4 }
 0x155   : > { %1582 = vmatprep.mubr.msk.f32.mxu1 %vm1953_vm0, %v1954_v1  ;;  %1671 = vmatpush3.bf16.msra.mxu1 %v1670_v15 }
 0x156   : > { %1672 = vmatprep.subr.bf16.mxu1 %v1952_v0  ;;  %vm567_vm13 = vcmp.eq.s32.totalorder %v2179_v3, %v559_v60  ;;  %vm568_vm14 = vcmp.eq.s32.totalorder %v2184_v5, %v559_v60  ;;  %vm569_vm15 = vcmp.eq.s32.totalorder %v2188_v7, %v559_v60  ;;  %vm570_vm1 = vcmp.eq.s32.totalorder %v2191_v8, %v559_v60 }
 0x157   : > { %vm2338_vm2 = vmpackc.low %vm568_vm14, %vm567_vm13 }
 0x158   : > { %vm2349_vm3 = vmpackc.low %vm570_vm1, %vm569_vm15 }
 0x159   : > { %1674 = vmatpush3.bf16.msra.mxu1 %v1673_v22 }
 0x15a   : > { %1681 = vmatprep.subr.bf16.mxu1 %v1952_v0 }
 0x227   : > { %v645_v62 = vpop.f32.mrb[0].mxu1 }
 0x228   : > { %v1540_v63 = vpop.f32.mrb[1].mxu1  ;;  %1550 = vmatmul.mubr.msk.f32.vlgmr.msra.gmra.mrb[2].mxu0 %vm653_vm11, %v645_v62 }
 0x229   : > { %1560 = vmatprep.mubr.msk.f32.mxu0 %vm1953_vm0, %v1954_v1  ;;  %1659 = vmatpush3.bf16.msra.mxu0 %v1658_v9 }
 0x22a   : > { %1660 = vmatprep.subr.bf16.mxu0 %v1952_v0 }
 0x22d   : > { %1662 = vmatpush3.bf16.msra.mxu0 %v1661_v18 }
 0x22e   : > { %1663 = vmatprep.subr.bf16.mxu0 %v1952_v0 }
 0x2fb   : > { %v723_v23 = vpop.f32.mrb[2].mxu0 }
 0x2fc   : > { %v728_v24 = vmul.f32 0.70710677, %v723_v23  ;;  %v1551_v25 = vpop.f32.mrb[3].mxu0  ;;  %v727_v53 = vmul.f32 0.5, %v723_v23 }
 0x2fe   : > { %v731_v26 = vand.u32 2147483647, %v728_v24  ;;  %vm729_vm12 = vcmp.ge.f32.partialorder %v728_v24, 0.0 }
 0x2ff   : > { %v730_v49 = vsel %vm729_vm12, 1.0, %v1957_v48 }
 0x300   : > { %v732_v30 = vmul.f32 0.3275911, %v731_v26  ;;  %v745_v32 = vsub.f32 0.0, %v731_v26 }
 0x302   : > { %v733_v31 = vadd.f32 1.0, %v732_v30  ;;  %v746_v34 = vmul.f32 %v745_v32, %v731_v26  ;;  %v1222_v32 = vsub.s32 0, %v2179_v3 }
 0x304   : > { %1773 = vrcp.f32 %v733_v31  ;;  %v747_v37 = vmul.f32 1.442695, %v746_v34 }
 0x306   : > { %1775 = vpow2.f32 %v747_v37 }
 0x30e   : > { %v1774_v33 = vpop.eup %1773 }
 0x30f   : > { %v736_v35 = vmul.f32 1.0614054, %v1774_v33 }
 0x310   : > { %v1776_v45 = vpop.eup %1775 }
 0x311   : > { %v737_v36 = vadd.f32 -1.4531521, %v736_v35 }
 0x313   : > { %v738_v38 = vmul.f32 %v1774_v33, %v737_v36 }
 0x315   : > { %v739_v39 = vadd.f32 1.4214138, %v738_v38 }
 0x317   : > { %v740_v40 = vmul.f32 %v1774_v33, %v739_v39 }
 0x319   : > { %v741_v41 = vadd.f32 -0.28449672, %v740_v40 }
 0x31b   : > { %v742_v42 = vmul.f32 %v1774_v33, %v741_v41 }
 0x31d   : > { %v743_v43 = vadd.f32 0.2548296, %v742_v42 }
 0x31f   : > { %v744_v44 = vmul.f32 %v1774_v33, %v743_v43 }
 0x321   : > { %v749_v46 = vmul.f32 %v1776_v45, %v744_v44 }
 0x323   : > { %v750_v47 = vsub.f32 1.0, %v749_v46 }
 0x325   : > { %v751_v50 = vmul.f32 %v750_v47, %v730_v49 }
 0x327   : > { %v752_v54 = vadd.f32 1.0, %v751_v50 }
 0x329   : > { %v753_v56 = vmul.f32 %v752_v54, %v727_v53 }
 0x32b   : > { %1561 = vmatmul.mubr.msk.f32.vlgmr.msra.gmra.mrb[4].mxu0 %vm653_vm11, %v753_v56  ;;  %1583 = vmatmul.mubr.msk.f32.vlgmr.msra.gmra.mrb[2].mxu1 %vm653_vm11, %v753_v56 }
 0x32c   : > { %1665 = vmatpush3.bf16.msra.mxu0 %v1664_v55  ;;  %1571 = vmatprep.mubr.msk.f32.mxu0 %vm1953_vm0, %v1954_v1 }
 0x32d   : > { %1666 = vmatprep.subr.bf16.mxu0 %v1952_v0  ;;  %1604 = vmatprep.mubr.msk.f32.mxu1 %vm1953_vm0, %v1954_v1 }
 0x32e   : > { %1683 = vmatpush3.bf16.msk.msra.mxu1 %vm2338_vm2, %v1955_v29 }
 0x32f   : > { %1684 = vmatprep.subr.bf16.mxu1 %v1952_v0 }
 0x330   : > { %1668 = vmatpush3.bf16.msra.mxu0 %v1667_v59 }
 0x331   : > { %1675 = vmatprep.subr.bf16.mxu0 %v1952_v0 }
 0x332   : > { %1686 = vmatpush3.bf16.msk.msra.mxu1 %vm2349_vm3, %v1955_v29 }
 0x333   : > { %1572 = vmatmul.mubr.msk.f32.vlgmr.msra.gmra.mrb[6].mxu0 %vm653_vm11, %v753_v56 }
 0x334   : > { %1593 = vmatprep.mubr.msk.f32.mxu0 %vm1953_vm0, %v1954_v1  ;;  %1677 = vmatpush3.bf16.msk.msra.mxu0 %vm2338_vm2, %v1955_v29 }
 0x335   : > { %1678 = vmatprep.subr.bf16.mxu0 %v1952_v0 }
 0x338   : > { %1680 = vmatpush3.bf16.msk.msra.mxu0 %vm2349_vm3, %v1955_v29 }
 0x339   : > { %1687 = vmatprep.subr.bf16.mxu0 %v1952_v0 }
 0x3fe   : > { %v827_v5 = vpop.f32.mrb[4].mxu0  ;;  %v977_v7 = vpop.f32.mrb[2].mxu1 }
 0x3ff   : > { %v1562_v8 = vpop.f32.mrb[5].mxu0  ;;  %v1584_v62 = vpop.f32.mrb[3].mxu1 }
 0x406   : > { %v902_v63 = vpop.f32.mrb[6].mxu0 }
 0x407   : > { %v981_v2 = vmax.f32 %v827_v5, %v902_v63  ;;  %v1573_v6 = vpop.f32.mrb[7].mxu0 }
 0x409   : > { %v982_v9 = vmax.f32 %v981_v2, %v977_v7 }
 0x40b   : > { %v983_v10 = vsub.f32 %v827_v5, %v982_v9  ;;  %v986_v14 = vsub.f32 %v902_v63, %v982_v9  ;;  %v989_v15 = vsub.f32 %v977_v7, %v982_v9 }
 0x40d   : > { %v984_v16 = vmul.f32 1.442695, %v983_v10  ;;  %v987_v17 = vmul.f32 1.442695, %v986_v14  ;;  %v990_v18 = vmul.f32 1.442695, %v989_v15 }
 0x40f   : > { %1777 = vpow2.f32 %v984_v16 }
 0x410   : > { %1779 = vpow2.f32 %v987_v17 }
 0x411   : > { %1781 = vpow2.f32 %v990_v18 }
 0x419   : > { %v1778_v20 = vpop.eup %1777 }
 0x41a   : > { %v1780_v21 = vpop.eup %1779 }
 0x41b   : > { %v992_v22 = vadd.f32 %v1780_v21, %v1778_v20  ;;  %v1782_v23 = vpop.eup %1781 }
 0x41d   : > { %v993_v24 = vadd.f32 %v1782_v23, %v992_v22 }
 0x41f   : > { %1783 = vrcp.f32 %v993_v24 }
 0x429   : > { %v1784_v25 = vpop.eup %1783 }
 0x42a   : > { %v996_v26 = vmul.f32 %v1784_v25, %v1778_v20  ;;  %v997_v30 = vmul.f32 %v1784_v25, %v1780_v21  ;;  %v998_v31 = vmul.f32 %v1784_v25, %v1782_v23 }
 0x42c   : > { %1594 = vmatmul.mubr.msk.f32.vlgmr.msra.gmra.mrb[8].mxu0 %vm653_vm11, %v996_v26  ;;  %1605 = vmatmul.mubr.msk.f32.vlgmr.msra.gmra.mrb[4].mxu1 %vm653_vm11, %v997_v30 }
 0x42d   : > { %1689 = vmatpush3.bf16.msk.msra.mxu0 %vm2338_vm2, %v1955_v29  ;;  %1615 = vmatprep.mubr.msk.f32.mxu0 %vm1953_vm0, %v1954_v1 }
 0x42e   : > { %1690 = vmatprep.subr.bf16.mxu0 %v1952_v0 }
 0x431   : > { %1692 = vmatpush3.bf16.msk.msra.mxu0 %vm2349_vm3, %v1955_v29 }
 0x434   : > { %1616 = vmatmul.mubr.msk.f32.vlgmr.msra.gmra.mrb[10].mxu0 %vm653_vm11, %v998_v31 }
 0x4ff   : > { %v1068_v33 = vpop.f32.mrb[8].mxu0  ;;  %v1141_v34 = vpop.f32.mrb[4].mxu1 }
 0x500   : > { %v1223_v35 = vrot.slane %v1068_v33, %v1222_v32  ;;  %v1232_v36 = vrot.slane %v1141_v34, %v1222_v32  ;;  %v1595_v37 = vpop.f32.mrb[9].mxu0  ;;  %v1606_v38 = vpop.f32.mrb[5].mxu1 }
 0x502   : > { %v1224_v1 = vmul.f32 %v1223_v35, %v2196_v11  ;;  %v1225_v0 = vmul.f32 %v1223_v35, %v2199_v12  ;;  %v1233_v39 = vmul.f32 %v1232_v36, %v2202_v13  ;;  %v1234_v29 = vmul.f32 %v1232_v36, %v2215_v19 }
 0x504   : > { %v1235_v40 = vadd.f32 %v1233_v39, %v1224_v1  ;;  %v1236_v41 = vadd.f32 %v1234_v29, %v1225_v0 }
 0x507   : > { %v1214_v3 = vpop.f32.mrb[10].mxu0 }
 0x508   : > { %v1243_v42 = vrot.slane %v1214_v3, %v1222_v32  ;;  %v1617_v43 = vpop.f32.mrb[11].mxu0 }
 0x50a   : > { %v1244_v44 = vmul.f32 %v1243_v42, %v2236_v27  ;;  %v1245_v11 = vmul.f32 %v1243_v42, %v2239_v28 }
 0x50c   : > { %v1246_v12 = vadd.f32 %v1244_v44, %v1235_v40  ;;  %v1247_v13 = vadd.f32 %v1245_v11, %v1236_v41 }
 0x50e   : > { %1248 = vst [vmem:[%s215_s22] sm:$0xff] %v1246_v12  ;;  %1249 = vst [vmem:[%s215_s22 + $0x8] sm:$0xff] %v1247_v13 }
 0x50f   : > { %1884 = shalt.err (!%p1881_p12)
}
 0x510   : > { %s1885_s10 = scalar_lea.hbm %s2387_s6, 256  ;;  %s1889_s26 = scalar_lea.hbm %s2434_s3, 512 }
 0x511   : > { %p1886_p3 = scmp.ne.s32.totalorder %s2387_s6, %s1885_s10  ;;  %p1890_p7 = scmp.lt.u32.totalorder %s2387_s6, %s2434_s3 }
 0x512   : > { %p1891_p9 = scmp.lt.u32.totalorder %s1889_s26, %s1885_s10  ;;  %p1893_p10 = scmp.lt.u32.totalorder %s1885_s10, %s2387_s6 }
 0x513   : > { %p1887_p6 = pnand %p1886_p3, %p2474_p1 }
 0x514   : > { %p1892_p8 = por %p1891_p9, %p1890_p7 }
 0x515   : > { %p1888_p13 = pneg %p1887_p6 }
 0x516   : > { %p1894_p4 = por %p1893_p10, %p1892_p8 }
 0x518   : > { %p1895_p0 = pnand %p1894_p4, %p1888_p13 }
 0x51a   : > { %1898 = shalt.err (!%p1895_p0)
}
 0x51b   : > { %s1959_s23 = smov 128   ;;  %s1960_s22 = smov 8  }
 0x51c   : > { %1706 = dma.vmem_to_hbm [thread:$0]  (%p2474_p1), %s2382_s11, 256, %s2387_s6, %s1251_s8, %s1959_s23, %s1959_s23, %s1960_s22  }
 0x51d PF: > { %s1279_s4 = sand.u32 1, %s1933_s12   ;;  %p2475_p2 = scmp.ne.s32.totalorder %s2443_s25, 0 }
 0x51e   : > { %p2476_p5 = scmp.ge.s32.totalorder %s1945_s15, 2  ;;  %s1280_s17 = scalar_lea.sflag [#allocation4], %s1279_s4 }
 0x520   : > { %p1720_p11 = pnand %p2476_p5, %p2475_p2 }
 0x522   : > { %1928 = dma.done.wait (!%p1720_p11), %s1280_s17, 256  }
 0x523   : > { %1930 = vsyncadd (!%p1720_p11), %s1280_s17, 4294967040  ;;  %p15_p12 = scmp.ge.s32.totalorder %s2006_s18, 4   ;;  %s2477_s12 = smov %s1937_s13 }
 0x524   : > { %s2478_s13 = smov %s1941_s14  ;;  %s2479_s14 = smov %s2018_s21 }
 0x525   : > { %s2480_s15 = smov %s2006_s18  ;;  %17 = sbr.rel (!%p15_p12) target bundleno = 5 (0x5), region = 88 }
 0x52c   :  { %1285 = vsyncpa [#allocation3], 1 }
 0x52d   :  { %1287 = vsyncpa [#allocation3 + $0x1], 1 }
 0x52e   :  { %1288 = vsyncpa [#allocation6], 1 }
 0x52f   :  { %1289 = vsyncpa [#allocation4], 1 }
 0x530   :  { %1291 = vsyncpa [#allocation4 + $0x1], 1 }

</bundles_post_ra>
